<compile_context>
chip_gen: v5e
topology: v5e:2x2
jax: 0.10.0
libtpu: 0.0.40
codegen_flags: <defaults>
</compile_context>

<pallas_src>
import jax
import jax.numpy as jnp
from jax.experimental import pallas as pl
from jax.experimental.pallas import tpu as pltpu


# ------------------------------------------------------------------ helpers --

def _round_up(n, m):
    return ((n + m - 1) // m) * m


def _ce_mean(emb, w, b, idx_col, n_valid):
    """mean over the first n_valid rows of -log_softmax(emb @ w + b)[row, idx[row]].

    emb:     (n_pad, D) f32
    w:       (D, C)     f32
    b:       (1, C)     f32
    idx_col: (n_pad, 1) int32
    """
    logits = jnp.dot(emb, w, preferred_element_type=jnp.float32) + b      # (n_pad, C)
    m = jnp.max(logits, axis=-1, keepdims=True)
    lse = jnp.log(jnp.sum(jnp.exp(logits - m), axis=-1, keepdims=True)) + m
    n_pad, c = logits.shape
    class_iota = jax.lax.broadcasted_iota(jnp.int32, (n_pad, c), 1)
    picked = jnp.sum(jnp.where(class_iota == idx_col, logits, 0.0),
                     axis=-1, keepdims=True)                              # logits[row, idx]
    nll = lse - picked                                                    # (n_pad, 1)
    row_iota = jax.lax.broadcasted_iota(jnp.int32, (n_pad, 1), 0)
    nll = jnp.where(row_iota < n_valid, nll, 0.0)                         # mask padded rows
    return jnp.sum(nll) * (1.0 / n_valid)


def _mse_mean(pred, tgt, n_valid, d):
    """F.mse_loss(pred, tgt, reduction='mean') over the first n_valid rows."""
    diff = pred - tgt
    sq = jnp.sum(diff * diff, axis=-1, keepdims=True)                     # (n_pad, 1)
    row_iota = jax.lax.broadcasted_iota(jnp.int32, (pred.shape[0], 1), 0)
    sq = jnp.where(row_iota < n_valid, sq, 0.0)
    return jnp.sum(sq) * (1.0 / (n_valid * d))


# ----------------------------------------------------------- fused Pallas op --

def fused_losses(heads, x_pred, x_tgt):
    """Single Pallas launch computing all categorical-CE means + the MSE mean.

    heads:  list of (emb[N,D], w[D,C], b[C], idx[N]) tuples.
    x_pred: (Nx, Dx) predicted coordinates.
    x_tgt:  (Nx, Dx) target coordinates.
    Returns (list of CE means, MSE mean) as f32 scalars.
    """
    num_heads = len(heads)
    inputs = []
    n_valid_per_head = []
    for emb, w, b, idx in heads:
        n, _ = emb.shape
        c = w.shape[-1]
        n_pad = _round_up(n, 8)
        inputs.append(jnp.pad(emb.astype(jnp.float32), ((0, n_pad - n), (0, 0))))
        inputs.append(w.astype(jnp.float32))
        inputs.append(b.reshape(1, c).astype(jnp.float32))
        inputs.append(jnp.pad(idx.astype(jnp.int32), (0, n_pad - n)).reshape(n_pad, 1))
        n_valid_per_head.append(n)

    n_x, d_x = x_pred.shape
    n_x_pad = _round_up(n_x, 8)
    inputs.append(jnp.pad(x_pred.astype(jnp.float32), ((0, n_x_pad - n_x), (0, 0))))
    inputs.append(jnp.pad(x_tgt.astype(jnp.float32), ((0, n_x_pad - n_x), (0, 0))))

    def kernel(*refs):
        in_refs, out_ref = refs[:-1], refs[-1]
        for h in range(num_heads):
            emb_r, w_r, b_r, idx_r = in_refs[4 * h: 4 * h + 4]
            out_ref[h] = _ce_mean(emb_r[...], w_r[...], b_r[...], idx_r[...],
                                  n_valid_per_head[h])
        pred_r = in_refs[4 * num_heads]
        tgt_r = in_refs[4 * num_heads + 1]
        out_ref[num_heads] = _mse_mean(pred_r[...], tgt_r[...], n_x, d_x)

    out = pl.pallas_call(
        kernel,
        out_shape=jax.ShapeDtypeStruct((num_heads + 1,), jnp.float32),
        in_specs=[pl.BlockSpec(memory_space=pltpu.MemorySpace.VMEM)
                  for _ in inputs],
        out_specs=pl.BlockSpec(memory_space=pltpu.MemorySpace.SMEM),
    )(*inputs)

    ce_means = [out[h] for h in range(num_heads)]
    return ce_means, out[num_heads]


# ------------------------------------------------------------- loss wrapper --

def baseline_loss(confs, params, embded_lig_h, embded_lig_x, embded_lig_e,
                  embded_inter_e, lig_h_type, lig_e_type, inter_e_type, lig_x):
    """Reproduces the loss-combination semantics of BaselineLoss.forward for the
    parts that do not depend on the external diffusion-transition objects."""
    # TODO(synk): lig_h/e/inter_e variational-bound terms need the transition
    # matrices (sample_xt_from_x0 / calc_posterior_and_sample / calc_loss) which
    # are external objects; they are left as 0.0 here.
    lig_h_loss = jnp.float32(0.0)
    lig_e_loss = jnp.float32(0.0)
    inter_e_loss = jnp.float32(0.0)

    heads = [
        (embded_lig_h, params["w_h"], params["b_h"], lig_h_type),
        (embded_lig_e, params["w_e"], params["b_e"], lig_e_type),
    ]
    if not confs["abl_igen"]:
        heads.append((embded_inter_e, params["w_i"], params["b_i"], inter_e_type))

    if confs["mse_train_objective"] == "data":
        x_tgt = lig_x
    elif confs["mse_train_objective"] == "noise":
        # TODO(synk): noise target (epsilon_lig_x) comes from lig_x_transition;
        # here we fall back to the data objective target tensor.
        x_tgt = lig_x
    else:
        raise NotImplementedError

    # Single fused Pallas launch: all CE heads + MSE, in-kernel mask + mean.
    ce_means, lig_x_loss = fused_losses(heads, embded_lig_x, x_tgt)
    lig_h_ce_loss = ce_means[0]
    lig_e_ce_loss = ce_means[1]
    inter_e_ce_loss = ce_means[2] if not confs["abl_igen"] else jnp.float32(0.0)

    r = confs["categorical_ce_loss_ratio"]
    loss = (lig_h_loss * confs["lig_h_loss"]
            + lig_x_loss * confs["lig_x_loss"]
            + lig_e_loss * confs["lig_e_loss"]
            + inter_e_loss * confs["inter_e_loss"]
            + lig_h_ce_loss * confs["lig_h_loss"] * r
            + lig_e_ce_loss * confs["lig_e_loss"] * r
            + inter_e_ce_loss * confs["inter_e_loss"] * r)

    loss_dict = {
        "lig_h_loss": lig_h_loss,
        "lig_x_loss": lig_x_loss,
        "lig_e_loss": lig_e_loss,
        "inter_e_loss": inter_e_loss,
        "lig_h_ce_loss": lig_h_ce_loss,
        "lig_e_ce_loss": lig_e_ce_loss,
        "inter_e_ce_loss": inter_e_ce_loss,
    }
    return loss, loss_dict


# --------------------------------------------------------------------- main --

if __name__ == "__main__":
    key = jax.random.PRNGKey(0)
    D = 32          # embedding width
    C_H = 8         # ligand-atom type classes
    C_E = 4         # ligand-bond type classes
    C_I = 4         # interaction-edge type classes
    N_H = 16        # ligand atoms
    N_E = 24        # ligand edges
    N_I = 12        # interaction edges

    ks = jax.random.split(key, 12)
    params = {
        "w_h": 0.1 * jax.random.normal(ks[0], (D, C_H), jnp.float32),
        "b_h": 0.01 * jax.random.normal(ks[1], (C_H,), jnp.float32),
        "w_e": 0.1 * jax.random.normal(ks[2], (D, C_E), jnp.float32),
        "b_e": 0.01 * jax.random.normal(ks[3], (C_E,), jnp.float32),
        "w_i": 0.1 * jax.random.normal(ks[4], (D, C_I), jnp.float32),
        "b_i": 0.01 * jax.random.normal(ks[5], (C_I,), jnp.float32),
    }

    # TODO(synk): these "embedded" features would come from model.propagate over
    # the receptor/ligand graphs; synthesized deterministically here.
    embded_lig_h = jax.random.normal(ks[6], (N_H, D), jnp.float32)
    embded_lig_e = jax.random.normal(ks[7], (N_E, D), jnp.float32)
    embded_inter_e = jax.random.normal(ks[8], (N_I, D), jnp.float32)
    embded_lig_x = jax.random.normal(ks[9], (N_H, 3), jnp.float32)   # pred coords
    lig_x = jax.random.normal(ks[10], (N_H, 3), jnp.float32)         # data coords

    lig_h_type = jax.random.randint(ks[11], (N_H,), 0, C_H)
    lig_e_type = jax.random.randint(jax.random.fold_in(key, 100), (N_E,), 0, C_E)
    inter_e_type = jax.random.randint(jax.random.fold_in(key, 101), (N_I,), 0, C_I)

    confs = {
        "lig_h_loss": 1.0,
        "lig_x_loss": 1.0,
        "lig_e_loss": 1.0,
        "inter_e_loss": 1.0,
        "categorical_ce_loss_ratio": 0.5,
        "mse_train_objective": "data",
        "abl_igen": False,
    }

    @jax.jit
    def run(params, embded_lig_h, embded_lig_x, embded_lig_e, embded_inter_e,
            lig_h_type, lig_e_type, inter_e_type, lig_x):
        return baseline_loss(confs, params, embded_lig_h, embded_lig_x,
                             embded_lig_e, embded_inter_e, lig_h_type,
                             lig_e_type, inter_e_type, lig_x)

    loss, loss_dict = run(params, embded_lig_h, embded_lig_x, embded_lig_e,
                          embded_inter_e, lig_h_type, lig_e_type, inter_e_type,
                          lig_x)
    loss = jax.block_until_ready(loss)
    jax.block_until_ready(loss_dict)
    assert jnp.isfinite(loss)
    print("KERNEL_OK")
</pallas_src>

<mosaic_0001>
module attributes {stable_mosaic.version = 11 : i64} {
  func.func @kernel(%arg0: memref<16x32xf32, #tpu.memory_space<vmem>>, %arg1: memref<32x8xf32, #tpu.memory_space<vmem>>, %arg2: memref<1x8xf32, #tpu.memory_space<vmem>>, %arg3: memref<16x1xi32, #tpu.memory_space<vmem>>, %arg4: memref<24x32xf32, #tpu.memory_space<vmem>>, %arg5: memref<32x4xf32, #tpu.memory_space<vmem>>, %arg6: memref<1x4xf32, #tpu.memory_space<vmem>>, %arg7: memref<24x1xi32, #tpu.memory_space<vmem>>, %arg8: memref<16x32xf32, #tpu.memory_space<vmem>>, %arg9: memref<32x4xf32, #tpu.memory_space<vmem>>, %arg10: memref<1x4xf32, #tpu.memory_space<vmem>>, %arg11: memref<16x1xi32, #tpu.memory_space<vmem>>, %arg12: memref<16x3xf32, #tpu.memory_space<vmem>>, %arg13: memref<16x3xf32, #tpu.memory_space<vmem>>, %arg14: memref<4xf32, #tpu.memory_space<smem>>) attributes {dimension_semantics = [], scalar_prefetch = 0 : i64, scratch_operands = 0 : i64, tpu.core_type = #tpu.core_type<tc>} {
    %c0 = arith.constant 0 : index
    %c0_0 = arith.constant 0 : index
    %0 = vector.load %arg0[%c0, %c0_0] : memref<16x32xf32, #tpu.memory_space<vmem>>, vector<16x32xf32>
    %c0_1 = arith.constant 0 : index
    %c0_2 = arith.constant 0 : index
    %1 = vector.load %arg1[%c0_1, %c0_2] : memref<32x8xf32, #tpu.memory_space<vmem>>, vector<32x8xf32>
    %c0_3 = arith.constant 0 : index
    %c0_4 = arith.constant 0 : index
    %2 = vector.load %arg2[%c0_3, %c0_4] : memref<1x8xf32, #tpu.memory_space<vmem>>, vector<1x8xf32>
    %c0_5 = arith.constant 0 : index
    %c0_6 = arith.constant 0 : index
    %3 = vector.load %arg3[%c0_5, %c0_6] : memref<16x1xi32, #tpu.memory_space<vmem>>, vector<16x1xi32>
    %cst = arith.constant dense<0.000000e+00> : vector<16x8xf32>
    %4 = tpu.matmul %0, %1, %cst {dimension_numbers = #tpu.dot_dimension_numbers<[1], [0], [0], [1], [0, 0, 1, 1], [], []>} : vector<16x32xf32>, vector<32x8xf32>, vector<16x8xf32> -> vector<16x8xf32>
    %5 = vector.broadcast %2 : vector<1x8xf32> to vector<16x8xf32>
    %6 = arith.addf %4, %5 : vector<16x8xf32>
    %cst_7 = arith.constant dense<0xFF800000> : vector<16xf32>
    %7 = vector.multi_reduction <maximumf>, %6, %cst_7 [1] : vector<16x8xf32> to vector<16xf32>
    %8 = vector.shape_cast %7 : vector<16xf32> to vector<16x1xf32>
    %9 = vector.broadcast %8 : vector<16x1xf32> to vector<16x8xf32>
    %10 = arith.subf %6, %9 : vector<16x8xf32>
    %11 = math.exp %10 : vector<16x8xf32>
    %cst_8 = arith.constant dense<0.000000e+00> : vector<16xf32>
    %12 = vector.multi_reduction <add>, %11, %cst_8 [1] : vector<16x8xf32> to vector<16xf32>
    %13 = vector.shape_cast %12 : vector<16xf32> to vector<16x1xf32>
    %14 = math.log %13 : vector<16x1xf32>
    %15 = arith.addf %14, %8 : vector<16x1xf32>
    %16 = tpu.iota {dimensions = array<i32: 1>} : vector<16x8xi32>
    %17 = vector.broadcast %3 : vector<16x1xi32> to vector<16x8xi32>
    %18 = arith.cmpi eq, %16, %17 : vector<16x8xi32>
    %cst_9 = arith.constant 0.000000e+00 : f32
    %19 = vector.broadcast %cst_9 : f32 to vector<16x8xf32>
    %20 = arith.select %18, %6, %19 : vector<16x8xi1>, vector<16x8xf32>
    %cst_10 = arith.constant dense<0.000000e+00> : vector<16xf32>
    %21 = vector.multi_reduction <add>, %20, %cst_10 [1] : vector<16x8xf32> to vector<16xf32>
    %22 = vector.shape_cast %21 : vector<16xf32> to vector<16x1xf32>
    %23 = arith.subf %15, %22 : vector<16x1xf32>
    %24 = tpu.iota {dimensions = array<i32: 0>} : vector<16x1xi32>
    %c16_i32 = arith.constant 16 : i32
    %25 = vector.broadcast %c16_i32 : i32 to vector<16x1xi32>
    %26 = arith.cmpi slt, %24, %25 : vector<16x1xi32>
    %cst_11 = arith.constant 0.000000e+00 : f32
    %27 = vector.broadcast %cst_11 : f32 to vector<16x1xf32>
    %28 = arith.select %26, %23, %27 : vector<16x1xi1>, vector<16x1xf32>
    %29 = vector.shape_cast %28 : vector<16x1xf32> to vector<1x16x1xf32>
    %cst_12 = arith.constant dense<0.000000e+00> : vector<1xf32>
    %30 = vector.multi_reduction <add>, %29, %cst_12 [1, 2] : vector<1x16x1xf32> to vector<1xf32>
    %31 = vector.shape_cast %30 : vector<1xf32> to vector<1x1x1xf32>
    %32 = vector.extract %31[0, 0, 0] : f32 from vector<1x1x1xf32>
    %cst_13 = arith.constant 6.250000e-02 : f32
    %33 = arith.mulf %32, %cst_13 : f32
    %c0_14 = arith.constant 0 : index
    %34 = memref.load %arg14[%c0_14] : memref<4xf32, #tpu.memory_space<smem>>
    memref.store %33, %arg14[%c0_14] : memref<4xf32, #tpu.memory_space<smem>>
    %c0_15 = arith.constant 0 : index
    %c0_16 = arith.constant 0 : index
    %35 = vector.load %arg4[%c0_15, %c0_16] : memref<24x32xf32, #tpu.memory_space<vmem>>, vector<24x32xf32>
    %c0_17 = arith.constant 0 : index
    %c0_18 = arith.constant 0 : index
    %36 = vector.load %arg5[%c0_17, %c0_18] : memref<32x4xf32, #tpu.memory_space<vmem>>, vector<32x4xf32>
    %c0_19 = arith.constant 0 : index
    %c0_20 = arith.constant 0 : index
    %37 = vector.load %arg6[%c0_19, %c0_20] : memref<1x4xf32, #tpu.memory_space<vmem>>, vector<1x4xf32>
    %c0_21 = arith.constant 0 : index
    %c0_22 = arith.constant 0 : index
    %38 = vector.load %arg7[%c0_21, %c0_22] : memref<24x1xi32, #tpu.memory_space<vmem>>, vector<24x1xi32>
    %cst_23 = arith.constant dense<0.000000e+00> : vector<24x4xf32>
    %39 = tpu.matmul %35, %36, %cst_23 {dimension_numbers = #tpu.dot_dimension_numbers<[1], [0], [0], [1], [0, 0, 1, 1], [], []>} : vector<24x32xf32>, vector<32x4xf32>, vector<24x4xf32> -> vector<24x4xf32>
    %40 = vector.broadcast %37 : vector<1x4xf32> to vector<24x4xf32>
    %41 = arith.addf %39, %40 : vector<24x4xf32>
    %cst_24 = arith.constant dense<0xFF800000> : vector<24xf32>
    %42 = vector.multi_reduction <maximumf>, %41, %cst_24 [1] : vector<24x4xf32> to vector<24xf32>
    %43 = vector.shape_cast %42 : vector<24xf32> to vector<24x1xf32>
    %44 = vector.broadcast %43 : vector<24x1xf32> to vector<24x4xf32>
    %45 = arith.subf %41, %44 : vector<24x4xf32>
    %46 = math.exp %45 : vector<24x4xf32>
    %cst_25 = arith.constant dense<0.000000e+00> : vector<24xf32>
    %47 = vector.multi_reduction <add>, %46, %cst_25 [1] : vector<24x4xf32> to vector<24xf32>
    %48 = vector.shape_cast %47 : vector<24xf32> to vector<24x1xf32>
    %49 = math.log %48 : vector<24x1xf32>
    %50 = arith.addf %49, %43 : vector<24x1xf32>
    %51 = tpu.iota {dimensions = array<i32: 1>} : vector<24x4xi32>
    %52 = vector.broadcast %38 : vector<24x1xi32> to vector<24x4xi32>
    %53 = arith.cmpi eq, %51, %52 : vector<24x4xi32>
    %cst_26 = arith.constant 0.000000e+00 : f32
    %54 = vector.broadcast %cst_26 : f32 to vector<24x4xf32>
    %55 = arith.select %53, %41, %54 : vector<24x4xi1>, vector<24x4xf32>
    %cst_27 = arith.constant dense<0.000000e+00> : vector<24xf32>
    %56 = vector.multi_reduction <add>, %55, %cst_27 [1] : vector<24x4xf32> to vector<24xf32>
    %57 = vector.shape_cast %56 : vector<24xf32> to vector<24x1xf32>
    %58 = arith.subf %50, %57 : vector<24x1xf32>
    %59 = tpu.iota {dimensions = array<i32: 0>} : vector<24x1xi32>
    %c24_i32 = arith.constant 24 : i32
    %60 = vector.broadcast %c24_i32 : i32 to vector<24x1xi32>
    %61 = arith.cmpi slt, %59, %60 : vector<24x1xi32>
    %cst_28 = arith.constant 0.000000e+00 : f32
    %62 = vector.broadcast %cst_28 : f32 to vector<24x1xf32>
    %63 = arith.select %61, %58, %62 : vector<24x1xi1>, vector<24x1xf32>
    %64 = vector.shape_cast %63 : vector<24x1xf32> to vector<1x24x1xf32>
    %cst_29 = arith.constant dense<0.000000e+00> : vector<1xf32>
    %65 = vector.multi_reduction <add>, %64, %cst_29 [1, 2] : vector<1x24x1xf32> to vector<1xf32>
    %66 = vector.shape_cast %65 : vector<1xf32> to vector<1x1x1xf32>
    %67 = vector.extract %66[0, 0, 0] : f32 from vector<1x1x1xf32>
    %cst_30 = arith.constant 0.0416666679 : f32
    %68 = arith.mulf %67, %cst_30 : f32
    %c1 = arith.constant 1 : index
    %69 = memref.load %arg14[%c1] : memref<4xf32, #tpu.memory_space<smem>>
    memref.store %68, %arg14[%c1] : memref<4xf32, #tpu.memory_space<smem>>
    %c0_31 = arith.constant 0 : index
    %c0_32 = arith.constant 0 : index
    %70 = vector.load %arg8[%c0_31, %c0_32] : memref<16x32xf32, #tpu.memory_space<vmem>>, vector<16x32xf32>
    %c0_33 = arith.constant 0 : index
    %c0_34 = arith.constant 0 : index
    %71 = vector.load %arg9[%c0_33, %c0_34] : memref<32x4xf32, #tpu.memory_space<vmem>>, vector<32x4xf32>
    %c0_35 = arith.constant 0 : index
    %c0_36 = arith.constant 0 : index
    %72 = vector.load %arg10[%c0_35, %c0_36] : memref<1x4xf32, #tpu.memory_space<vmem>>, vector<1x4xf32>
    %c0_37 = arith.constant 0 : index
    %c0_38 = arith.constant 0 : index
    %73 = vector.load %arg11[%c0_37, %c0_38] : memref<16x1xi32, #tpu.memory_space<vmem>>, vector<16x1xi32>
    %cst_39 = arith.constant dense<0.000000e+00> : vector<16x4xf32>
    %74 = tpu.matmul %70, %71, %cst_39 {dimension_numbers = #tpu.dot_dimension_numbers<[1], [0], [0], [1], [0, 0, 1, 1], [], []>} : vector<16x32xf32>, vector<32x4xf32>, vector<16x4xf32> -> vector<16x4xf32>
    %75 = vector.broadcast %72 : vector<1x4xf32> to vector<16x4xf32>
    %76 = arith.addf %74, %75 : vector<16x4xf32>
    %cst_40 = arith.constant dense<0xFF800000> : vector<16xf32>
    %77 = vector.multi_reduction <maximumf>, %76, %cst_40 [1] : vector<16x4xf32> to vector<16xf32>
    %78 = vector.shape_cast %77 : vector<16xf32> to vector<16x1xf32>
    %79 = vector.broadcast %78 : vector<16x1xf32> to vector<16x4xf32>
    %80 = arith.subf %76, %79 : vector<16x4xf32>
    %81 = math.exp %80 : vector<16x4xf32>
    %cst_41 = arith.constant dense<0.000000e+00> : vector<16xf32>
    %82 = vector.multi_reduction <add>, %81, %cst_41 [1] : vector<16x4xf32> to vector<16xf32>
    %83 = vector.shape_cast %82 : vector<16xf32> to vector<16x1xf32>
    %84 = math.log %83 : vector<16x1xf32>
    %85 = arith.addf %84, %78 : vector<16x1xf32>
    %86 = tpu.iota {dimensions = array<i32: 1>} : vector<16x4xi32>
    %87 = vector.broadcast %73 : vector<16x1xi32> to vector<16x4xi32>
    %88 = arith.cmpi eq, %86, %87 : vector<16x4xi32>
    %cst_42 = arith.constant 0.000000e+00 : f32
    %89 = vector.broadcast %cst_42 : f32 to vector<16x4xf32>
    %90 = arith.select %88, %76, %89 : vector<16x4xi1>, vector<16x4xf32>
    %cst_43 = arith.constant dense<0.000000e+00> : vector<16xf32>
    %91 = vector.multi_reduction <add>, %90, %cst_43 [1] : vector<16x4xf32> to vector<16xf32>
    %92 = vector.shape_cast %91 : vector<16xf32> to vector<16x1xf32>
    %93 = arith.subf %85, %92 : vector<16x1xf32>
    %94 = tpu.iota {dimensions = array<i32: 0>} : vector<16x1xi32>
    %c12_i32 = arith.constant 12 : i32
    %95 = vector.broadcast %c12_i32 : i32 to vector<16x1xi32>
    %96 = arith.cmpi slt, %94, %95 : vector<16x1xi32>
    %cst_44 = arith.constant 0.000000e+00 : f32
    %97 = vector.broadcast %cst_44 : f32 to vector<16x1xf32>
    %98 = arith.select %96, %93, %97 : vector<16x1xi1>, vector<16x1xf32>
    %99 = vector.shape_cast %98 : vector<16x1xf32> to vector<1x16x1xf32>
    %cst_45 = arith.constant dense<0.000000e+00> : vector<1xf32>
    %100 = vector.multi_reduction <add>, %99, %cst_45 [1, 2] : vector<1x16x1xf32> to vector<1xf32>
    %101 = vector.shape_cast %100 : vector<1xf32> to vector<1x1x1xf32>
    %102 = vector.extract %101[0, 0, 0] : f32 from vector<1x1x1xf32>
    %cst_46 = arith.constant 0.0833333358 : f32
    %103 = arith.mulf %102, %cst_46 : f32
    %c2 = arith.constant 2 : index
    %104 = memref.load %arg14[%c2] : memref<4xf32, #tpu.memory_space<smem>>
    memref.store %103, %arg14[%c2] : memref<4xf32, #tpu.memory_space<smem>>
    %c0_47 = arith.constant 0 : index
    %c0_48 = arith.constant 0 : index
    %105 = vector.load %arg12[%c0_47, %c0_48] : memref<16x3xf32, #tpu.memory_space<vmem>>, vector<16x3xf32>
    %c0_49 = arith.constant 0 : index
    %c0_50 = arith.constant 0 : index
    %106 = vector.load %arg13[%c0_49, %c0_50] : memref<16x3xf32, #tpu.memory_space<vmem>>, vector<16x3xf32>
    %107 = arith.subf %105, %106 : vector<16x3xf32>
    %108 = arith.mulf %107, %107 : vector<16x3xf32>
    %cst_51 = arith.constant dense<0.000000e+00> : vector<16xf32>
    %109 = vector.multi_reduction <add>, %108, %cst_51 [1] : vector<16x3xf32> to vector<16xf32>
    %110 = vector.shape_cast %109 : vector<16xf32> to vector<16x1xf32>
    %111 = tpu.iota {dimensions = array<i32: 0>} : vector<16x1xi32>
    %c16_i32_52 = arith.constant 16 : i32
    %112 = vector.broadcast %c16_i32_52 : i32 to vector<16x1xi32>
    %113 = arith.cmpi slt, %111, %112 : vector<16x1xi32>
    %cst_53 = arith.constant 0.000000e+00 : f32
    %114 = vector.broadcast %cst_53 : f32 to vector<16x1xf32>
    %115 = arith.select %113, %110, %114 : vector<16x1xi1>, vector<16x1xf32>
    %116 = vector.shape_cast %115 : vector<16x1xf32> to vector<1x16x1xf32>
    %cst_54 = arith.constant dense<0.000000e+00> : vector<1xf32>
    %117 = vector.multi_reduction <add>, %116, %cst_54 [1, 2] : vector<1x16x1xf32> to vector<1xf32>
    %118 = vector.shape_cast %117 : vector<1xf32> to vector<1x1x1xf32>
    %119 = vector.extract %118[0, 0, 0] : f32 from vector<1x1x1xf32>
    %cst_55 = arith.constant 0.020833334 : f32
    %120 = arith.mulf %119, %cst_55 : f32
    %c3 = arith.constant 3 : index
    %121 = memref.load %arg14[%c3] : memref<4xf32, #tpu.memory_space<smem>>
    memref.store %120, %arg14[%c3] : memref<4xf32, #tpu.memory_space<smem>>
    return
  }
}

</mosaic_0001>

<bundles_post_ra>
// kernel: run.1
= control target key start
LH: loop header
LB: loop body
LE: loop exit
PB: predicated region body
PF: predicated region fallthrough
CT: control target
= control target key end

     0   :  { %v513_v6 = vmov 0   ;;  %vm60_vm0 = vcmask 261120   ;;  %s795_s0 = inlined_call_operand.vmem [shape: f32[16,32], index: 0, kind: input, shape index: {}]   ;;  %s796_s1 = inlined_call_operand.vmem [shape: f32[32,8], index: 1, kind: input, shape index: {}]   ;;  %s797_s2 = inlined_call_operand.vmem [shape: f32[1,8], index: 2, kind: input, shape index: {}]   ;;  %s798_s3 = inlined_call_operand.vmem [shape: s32[16,1], index: 3, kind: input, shape index: {}]   ;;  %s799_s4 = inlined_call_operand.vmem [shape: f32[24,32], index: 4, kind: input, shape index: {}]   ;;  %s800_s5 = inlined_call_operand.vmem [shape: f32[32,4], index: 5, kind: input, shape index: {}]   ;;  %s801_s6 = inlined_call_operand.vmem [shape: f32[1,4], index: 6, kind: input, shape index: {}]   ;;  %s802_s7 = inlined_call_operand.vmem [shape: s32[24,1], index: 7, kind: input, shape index: {}]   ;;  %s803_s8 = inlined_call_operand.vmem [shape: f32[16,32], index: 8, kind: input, shape index: {}]   ;;  %s804_s9 = inlined_call_operand.vmem [shape: f32[32,4], index: 9, kind: input, shape index: {}]   ;;  %s805_s10 = inlined_call_operand.vmem [shape: f32[1,4], index: 10, kind: input, shape index: {}]   ;;  %s806_s11 = inlined_call_operand.vmem [shape: s32[16,1], index: 11, kind: input, shape index: {}]   ;;  %s807_s12 = inlined_call_operand.vmem [shape: f32[16,3], index: 12, kind: input, shape index: {}]   ;;  %s808_s13 = inlined_call_operand.vmem [shape: f32[16,3], index: 13, kind: input, shape index: {}]   ;;  %s809_s14 = inlined_call_operand.vmem [shape: f32[4], index: 14, kind: output, shape index: {}]  }
   0x1   :  { %v53_v0 = vld [vmem:[%s796_s1 + $0x18] sm:$0xff]  ;;  %v52_v2 = vld [vmem:[%s796_s1 + $0x10] sm:$0xff]  ;;  %v51_v4 = vld [vmem:[%s796_s1 + $0x8] sm:$0xff]  ;;  %466 = vset.pattern.permute.xlu2 %v513_v6 }
   0x2   :  { %v164_v1 = vld [vmem:[%s800_s5 + $0x18] sm:$0xff]  ;;  %79 = vmatpush.msra.mxu0 %v53_v0  ;;  %v163_v3 = vld [vmem:[%s800_s5 + $0x10] sm:$0xff]  ;;  %v162_v5 = vld [vmem:[%s800_s5 + $0x8] sm:$0xff] }
   0x3   :  { %193 = vmatpush.msra.mxu1 %v164_v1  ;;  %451 = vmatpush.msra.mxu3 %v164_v1  ;;  %v300_v7 = vld [vmem:[%s804_s9 + $0x18] sm:$0xff]  ;;  %v50_v8 = vld [vmem:[%s796_s1] sm:$0xff]  ;;  %v299_v10 = vld [vmem:[%s804_s9 + $0x10] sm:$0xff] }
   0x4   :  { %80 = vmatpush.msra.mxu0 %v52_v2  ;;  %v161_v9 = vld [vmem:[%s800_s5] sm:$0xff]  ;;  %325 = vmatpush.msra.mxu2 %v300_v7  ;;  %v159_v13 = vld [vmem:[%s799_s4 + $0x8] sm:$0xff] }
   0x5   :  { %194 = vmatpush.msra.mxu1 %v163_v3  ;;  %452 = vmatpush.msra.mxu3 %v163_v3  ;;  %v48_v11 = vld [vmem:[%s795_s0] sm:$0xff]  ;;  %v298_v14 = vld [vmem:[%s804_s9 + $0x8] sm:$0xff] }
   0x6   :  { %81 = vmatpush.msra.mxu0 %v51_v4  ;;  %v158_v12 = vld [vmem:[%s799_s4] sm:$0xff]  ;;  %326 = vmatpush.msra.mxu2 %v299_v10  ;;  %v167_v15 = vld [vmem:[%s802_s7 + $0x8] sm:$0xff] }
   0x7   :  { %195 = vmatpush.msra.mxu1 %v162_v5  ;;  %453 = vmatpush.msra.mxu3 %v162_v5  ;;  %v297_v16 = vld [vmem:[%s804_s9] sm:$0xff] }
   0x8   :  { %82 = vmatpush.msra.mxu0 %v50_v8 }
   0x9   :  { %196 = vmatpush.msra.mxu1 %v161_v9  ;;  %444 = vmatmul.msk.f32.vlgmr.msra.gmra.mxu0 %vm60_vm0, %v48_v11 }
   0xa   :  { %446 = vmatmul.msk.f32.vlgmr.msra.gmra.mxu1 %vm60_vm0, %v158_v12 }
   0xb   :  { %19 = vsyncpa [#allocation3], 0  ;;  %454 = vmatpush.msra.mxu3 %v161_v9  ;;  %327 = vmatpush.msra.mxu2 %v298_v14  ;;  %v295_v17 = vld [vmem:[%s803_s8] sm:$0xff]  ;;  %v49_v19 = vld [vmem:[%s795_s0 + $0x8] sm:$0xff]  ;;  %vm207_vm1 = vcmask 31744   ;;  %vm90_vm2 = vcmask 64512   ;;  %v115_v50 = vlaneseq }
   0xc   :  { %v166_v18 = vld [vmem:[%s802_s7] sm:$0xff]  ;;  %447 = vmatmul.msk.f32.vlgmr.msra.gmra.mxu3 %vm60_vm0, %v159_v13  ;;  %248 = vperm.xlu2 %466, %v167_v15   ;;  %v160_v20 = vld [vmem:[%s799_s4 + $0x10] sm:$0xff]  ;;  %v296_v22 = vld [vmem:[%s803_s8 + $0x8] sm:$0xff]  ;;  %vm405_vm8 = vcmask 23552   ;;  %vm142_vm11 = vcmask 7168   ;;  %s434_s20 = sshll.u32 %s809_s14, 4  ;;  %s435_s20 = int_to_ptr.vmem [resolvable:$true] %s434_s20 }
   0xd   :  { %328 = vmatpush.msra.mxu2 %v297_v16  ;;  %465 = vset.pattern.permute.xlu1 %v513_v6  ;;  %v55_v21 = vld [vmem:[%s798_s3] sm:$0xff]  ;;  %v56_v44 = vld [vmem:[%s798_s3 + $0x8] sm:$0xff]  ;;  %v168_v46 = vld [vmem:[%s802_s7 + $0x10] sm:$0xff]  ;;  %v704_v51 = vand.u32 127, %v115_v50  ;;  %s514_s5 = smov [#allocation2]  }
   0xe   :  { %449 = vmatmul.msk.f32.vlgmr.msra.gmra.mxu2 %vm60_vm0, %v295_v17  ;;  %245 = vperm.xlu1 %465, %v166_v18   ;;  %v468_v23 = vld [vmem:[%s797_s2] ss:$0 sm:$0xff]  ;;  %v303_v45 = vld [vmem:[%s806_s11 + $0x8] sm:$0xff] }
   0xf   :  { %467 = vset.pattern.permute.xlu0 %v513_v6  ;;  %v469_v24 = vld [vmem:[%s801_s6] ss:$0 sm:$0xff] }
  0x10   :  { %v470_v35 = vld [vmem:[%s805_s10] ss:$0 sm:$0xff] }
  0x11   :  { %445 = vmatmul.msk.f32.gmra.mxu0 %vm60_vm0, %v49_v19  ;;  %v302_v55 = vld [vmem:[%s806_s11] sm:$0xff] }
  0x14   :  { %448 = vmatmul.msk.f32.gmra.mxu3 %vm60_vm0, %v160_v20  ;;  %118 = vperm.xlu2 %466, %v55_v21  }
  0x16   :  { %450 = vmatmul.msk.f32.gmra.mxu2 %vm60_vm0, %v296_v22 }
  0x66   :  { %v249_v52 = vpop.permute.xlu2 %248 }
  0x67   :  { %vm254_vm3 = vcmp.eq.s32.totalorder %v704_v51, %v249_v52 }
  0x6e   :  { %v119_v57 = vpop.permute.xlu2 %118 }
  0x6f   :  { %vm123_vm6 = vcmp.eq.s32.totalorder %v704_v51, %v119_v57 }
  0x80   :  { %v246_v56 = vpop.permute.xlu1 %245 }
  0x81   :  { %vm253_vm4 = vcmp.eq.s32.totalorder %v704_v51, %v246_v56 }
  0x86   :  { %v84_v25 = vpop.f32.mrf.mxu0 }
  0x87   :  { %v198_v26 = vpop.f32.mrf.mxu1  ;;  %v669_v27 = vadd.f32 %v468_v23, %v84_v25 }
  0x88   :  { %v199_v28 = vadd.f32 %v469_v24, %v198_v26 }
  0x89   :  { %v91_v30 = vsel %vm90_vm2, %v669_v27, -inf }
  0x8a   :  { %v208_v29 = vsel %vm207_vm1, %v199_v28, -inf  ;;  %92 = vmax.xlane.f32.xlu1 %v91_v30  ;;  %v256_v6 = vsel %vm253_vm4, %v199_v28, 0.0 }
  0x8b   :  { %209 = vmax.xlane.f32.xlu0 %v208_v29  ;;  %v259_v11 = vsel %vm207_vm1, %v256_v6, 0.0 }
  0x8e   :  { %v87_v31 = vpop.f32.mrf.mxu0 }
  0x8f   :  { %v201_v32 = vpop.f32.mrf.mxu3  ;;  %v674_v33 = vadd.f32 %v468_v23, %v87_v31  ;;  %v125_v31 = vsel %vm123_vm6, %v669_v27, 0.0 }
  0x90   :  { %v202_v34 = vadd.f32 %v469_v24, %v201_v32  ;;  %v127_v32 = vsel %vm90_vm2, %v125_v31, 0.0 }
  0x91   :  { %v330_v36 = vpop.f32.mrf.mxu2  ;;  %v94_v38 = vsel %vm90_vm2, %v674_v33, -inf }
  0x92   :  { %v211_v37 = vsel %vm207_vm1, %v202_v34, -inf  ;;  %95 = vmax.xlane.f32.xlu2 %v94_v38  ;;  %v682_v39 = vadd.f32 %v470_v35, %v330_v36  ;;  %v257_v53 = vsel %vm254_vm3, %v202_v34, 0.0  ;;  %v399_v36 = vld [vmem:[%s808_s13] sm:$0xff] }
  0x93   :  { %212 = vmax.xlane.f32.xlu0 %v211_v37  ;;  %v262_v54 = vsel %vm207_vm1, %v257_v53, 0.0 }
  0x94   :  { %v336_v42 = vsel %vm207_vm1, %v682_v39, -inf }
  0x97   :  { %v204_v40 = vpop.f32.mrf.mxu3 }
  0x98   :  { %v684_v41 = vadd.f32 %v469_v24, %v204_v40 }
  0x99   :  { %v333_v47 = vpop.f32.mrf.mxu2 }
  0x9a   :  { %v214_v43 = vsel %vm207_vm1, %v684_v41, -inf  ;;  %v699_v48 = vadd.f32 %v470_v35, %v333_v47  ;;  %v397_v35 = vld [vmem:[%s807_s12] sm:$0xff]  ;;  %v398_v47 = vld [vmem:[%s807_s12 + $0x8] sm:$0xff] }
  0x9b   :  { %337 = vmax.xlane.f32.xlu0 %v336_v42  ;;  %215 = vmax.xlane.f32.xlu2 %v214_v43  ;;  %v401_v37 = vsub.f32 %v397_v35, %v399_v36 }
  0x9c   :  { %v339_v49 = vsel %vm207_vm1, %v699_v48, -inf }
  0x9d   :  { %v403_v38 = vmul.f32 %v401_v37, %v401_v37 }
  0xa3   :  { %121 = vperm.xlu1 %465, %v56_v44  }
  0xaf   :  { %364 = vperm.xlu0 %467, %v303_v45  }
  0xb3   :  { %251 = vperm.xlu2 %466, %v168_v46  }
  0xcd   :  { %340 = vmax.xlane.f32.xlu1 %v339_v49  ;;  %v400_v49 = vld [vmem:[%s808_s13 + $0x8] sm:$0xff] }
  0xdc   :  { %263 = vadd.xlane.f32.xlu2 %v262_v54 }
  0xe6   :  { %361 = vperm.xlu1 %465, %v302_v55  }
  0xfd   :  { %v713_v59 = vpop.xlane.xlu1 %92 }
  0xfe   :  { %v711_v58 = vpop.xlane.xlu0 %209  ;;  %v97_v62 = vsub.f32 %v669_v27, %v713_v59  ;;  %v406_v27 = vsel %vm405_vm8, %v403_v38, 0.0 }
  0xff   :  { %v217_v60 = vsub.f32 %v199_v28, %v711_v58 }
 0x100   :  { %v99_v63 = vmul.f32 1.442695, %v97_v62 }
 0x101   :  { %v220_v61 = vmul.f32 1.442695, %v217_v60 }
 0x103   :  { %471 = vpow2.f32 %v220_v61 }
 0x104   :  { %473 = vpow2.f32 %v99_v63 }
 0x105   :  { %v720_v1 = vpop.xlane.xlu2 %95 }
 0x106   :  { %v718_v0 = vpop.xlane.xlu0 %212  ;;  %v98_v9 = vsub.f32 %v674_v33, %v720_v1 }
 0x107   :  { %v218_v2 = vsub.f32 %v202_v34, %v718_v0 }
 0x108   :  { %v101_v14 = vmul.f32 1.442695, %v98_v9 }
 0x109   :  { %v472_v3 = vpop.eup %471  ;;  %v222_v5 = vmul.f32 1.442695, %v218_v2 }
 0x10a   :  { %v226_v4 = vsel %vm207_vm1, %v472_v3, 0.0  ;;  %v474_v8 = vpop.eup %473 }
 0x10b   :  { %227 = vadd.xlane.f32.xlu2 %v226_v4  ;;  %475 = vpow2.f32 %v222_v5  ;;  %v103_v13 = vsel %vm90_vm2, %v474_v8, 0.0 }
 0x10e   :  { %v725_v7 = vpop.xlane.xlu2 %215  ;;  %v733_v16 = vpop.xlane.xlu0 %337 }
 0x10f   :  { %v219_v10 = vsub.f32 %v684_v41, %v725_v7  ;;  %v342_v20 = vsub.f32 %v682_v39, %v733_v16 }
 0x110   :  { %260 = vadd.xlane.f32.xlu1 %v259_v11 }
 0x111   :  { %v224_v12 = vmul.f32 1.442695, %v219_v10  ;;  %v476_v15 = vpop.eup %475  ;;  %v344_v23 = vmul.f32 1.442695, %v342_v20 }
 0x112   :  { %v229_v17 = vsel %vm207_vm1, %v476_v15, 0.0 }
 0x113   :  { %104 = vadd.xlane.f32.xlu2 %v103_v13  ;;  %477 = vpow2.f32 %v224_v12 }
 0x114   :  { %479 = vpow2.f32 %v101_v14 }
 0x115   :  { %v122_v19 = vpop.permute.xlu1 %121  ;;  %481 = vpow2.f32 %v344_v23 }
 0x116   :  { %vm124_vm5 = vcmp.eq.s32.totalorder %v704_v51, %v122_v19  ;;  %v252_v45 = vpop.permute.xlu2 %251 }
 0x117   :  { %v126_v25 = vsel %vm124_vm5, %v674_v33, 0.0  ;;  %vm255_vm9 = vcmp.eq.s32.totalorder %v704_v51, %v252_v45 }
 0x118   :  { %230 = vadd.xlane.f32.xlu1 %v229_v17  ;;  %v130_v28 = vsel %vm90_vm2, %v126_v25, 0.0  ;;  %v258_v52 = vsel %vm255_vm9, %v684_v41, 0.0 }
 0x119   :  { %v478_v18 = vpop.eup %477  ;;  %v265_v53 = vsel %vm207_vm1, %v258_v52, 0.0 }
 0x11a   :  { %v232_v21 = vsel %vm207_vm1, %v478_v18, 0.0  ;;  %v480_v22 = vpop.eup %479 }
 0x11b   :  { %233 = vadd.xlane.f32.xlu2 %v232_v21  ;;  %v106_v24 = vsel %vm90_vm2, %v480_v22, 0.0  ;;  %v482_v33 = vpop.eup %481 }
 0x11c   :  { %v348_v34 = vsel %vm207_vm1, %v482_v33, 0.0 }
 0x120   :  { %107 = vadd.xlane.f32.xlu1 %v106_v24 }
 0x121   :  { %v365_v26 = vpop.permute.xlu0 %364 }
 0x122   :  { %vm367_vm7 = vcmp.eq.s32.totalorder %v704_v51, %v365_v26 }
 0x123   :  { %v369_v29 = vsel %vm367_vm7, %v699_v48, 0.0  ;;  %131 = vadd.xlane.f32.xlu2 %v130_v28 }
 0x124   :  { %v373_v30 = vsel %vm207_vm1, %v369_v29, 0.0 }
 0x125   :  { %374 = vadd.xlane.f32.xlu0 %v373_v30 }
 0x128   :  { %128 = vadd.xlane.f32.xlu1 %v127_v32  ;;  %v136_v32 = vshrl.u32 %v115_v50, 7 }
 0x12a   :  { %v137_v37 = vadd.s32 8, %v136_v32 }
 0x12b   :  { %407 = vadd.xlane.f32.xlu2 %v406_v27 }
 0x12c   :  { %vm379_vm12 = vcmp.lt.s32.totalorder %v137_v37, 12 }
 0x12d   :  { %349 = vadd.xlane.f32.xlu0 %v348_v34 }
 0x140   :  { %v757_v40 = vpop.xlane.xlu1 %340 }
 0x141   :  { %v343_v42 = vsub.f32 %v699_v48, %v757_v40  ;;  %v402_v48 = vsub.f32 %v398_v47, %v400_v49 }
 0x143   :  { %v346_v43 = vmul.f32 1.442695, %v343_v42  ;;  %v404_v54 = vmul.f32 %v402_v48, %v402_v48 }
 0x145   :  { %483 = vpow2.f32 %v346_v43  ;;  %v409_v57 = vsel %vm405_vm8, %v404_v54, 0.0 }
 0x14b   :  { %v484_v44 = vpop.eup %483 }
 0x14c   :  { %v351_v46 = vsel %vm207_vm1, %v484_v44, 0.0 }
 0x14d   :  { %352 = vadd.xlane.f32.xlu0 %v351_v46 }
 0x14f   :  { %v264_v61 = vpop.xlane.xlu2 %263 }
 0x155   :  { %266 = vadd.xlane.f32.xlu0 %v265_v53 }
 0x158   :  { %v362_v55 = vpop.permute.xlu1 %361 }
 0x159   :  { %vm366_vm10 = vcmp.eq.s32.totalorder %v704_v51, %v362_v55 }
 0x15a   :  { %v368_v56 = vsel %vm366_vm10, %v682_v39, 0.0 }
 0x15b   :  { %v370_v60 = vsel %vm207_vm1, %v368_v56, 0.0 }
 0x15c   :  { %371 = vadd.xlane.f32.xlu1 %v370_v60 }
 0x15d   :  { %410 = vadd.xlane.f32.xlu0 %v409_v57 }
 0x17e   :  { %v228_v62 = vpop.xlane.xlu2 %227 }
 0x17f   :  { %485 = vlog2.f32 %v228_v62 }
 0x183   :  { %v261_v63 = vpop.xlane.xlu1 %260 }
 0x185   :  { %v486_v41 = vpop.eup %485 }
 0x186   :  { %v105_v2 = vpop.xlane.xlu2 %104  ;;  %v236_v4 = vmul.f32 0.6931472, %v486_v41 }
 0x188   :  { %v241_v51 = vadd.f32 %v236_v4, %v711_v58 }
 0x18a   :  { %v268_v10 = vsub.f32 %v241_v51, %v261_v63 }
 0x18b   :  { %v231_v3 = vpop.xlane.xlu1 %230 }
 0x18c   :  { %487 = vlog2.f32 %v231_v3  ;;  %v278_v14 = vsel %vm142_vm11, %v268_v10, 0.0 }
 0x18d   :  { %489 = vlog2.f32 %v105_v2 }
 0x18e   :  { %v234_v9 = vpop.xlane.xlu2 %233 }
 0x192   :  { %v488_v5 = vpop.eup %487 }
 0x193   :  { %v238_v39 = vmul.f32 0.6931472, %v488_v5  ;;  %v108_v6 = vpop.xlane.xlu1 %107  ;;  %v490_v8 = vpop.eup %489 }
 0x194   :  { %491 = vlog2.f32 %v108_v6  ;;  %v110_v12 = vmul.f32 0.6931472, %v490_v8 }
 0x195   :  { %v242_v11 = vadd.f32 %v238_v39, %v718_v0  ;;  %493 = vlog2.f32 %v234_v9 }
 0x196   :  { %v113_v58 = vadd.f32 %v110_v12, %v713_v59  ;;  %v132_v23 = vpop.xlane.xlu2 %131 }
 0x197   :  { %v269_v13 = vsub.f32 %v242_v11, %v264_v61 }
 0x198   :  { %v375_v28 = vpop.xlane.xlu0 %374 }
 0x199   :  { %v279_v15 = vsel %vm142_vm11, %v269_v13, 0.0 }
 0x19a   :  { %v492_v17 = vpop.eup %491  ;;  %v280_v18 = vadd.f32 %v279_v15, %v278_v14 }
 0x19b   :  { %v112_v19 = vmul.f32 0.6931472, %v492_v17  ;;  %v129_v20 = vpop.xlane.xlu1 %128  ;;  %v494_v30 = vpop.eup %493 }
 0x19c   :  { %v133_v22 = vsub.f32 %v113_v58, %v129_v20  ;;  %v240_v59 = vmul.f32 0.6931472, %v494_v30 }
 0x19d   :  { %v114_v21 = vadd.f32 %v112_v19, %v720_v1 }
 0x19e   :  { %v143_v0 = vsel %vm142_vm11, %v133_v22, 0.0  ;;  %v243_v34 = vadd.f32 %v240_v59, %v725_v7  ;;  %v408_v45 = vpop.xlane.xlu2 %407 }
 0x19f   :  { %v134_v24 = vsub.f32 %v114_v21, %v132_v23  ;;  %v414_v49 = vsel %vm142_vm11, %v408_v45, 0.0 }
 0x1a0   :  { %v350_v29 = vpop.xlane.xlu0 %349 }
 0x1a1   :  { %v144_v25 = vsel %vm142_vm11, %v134_v24, 0.0  ;;  %495 = vlog2.f32 %v350_v29 }
 0x1a2   :  { %v145_v26 = vadd.f32 %v144_v25, %v143_v0 }
 0x1a4   :  { %146 = vadd.xlane.f32.xlu1 %v145_v26 }
 0x1a7   :  { %v496_v1 = vpop.eup %495 }
 0x1a8   :  { %v355_v27 = vmul.f32 0.6931472, %v496_v1 }
 0x1aa   :  { %v358_v50 = vadd.f32 %v355_v27, %v733_v16 }
 0x1c0   :  { %v353_v31 = vpop.xlane.xlu0 %352 }
 0x1c1   :  { %497 = vlog2.f32 %v353_v31 }
 0x1c7   :  { %v498_v33 = vpop.eup %497 }
 0x1c8   :  { %v357_v35 = vmul.f32 0.6931472, %v498_v33  ;;  %v267_v36 = vpop.xlane.xlu0 %266 }
 0x1c9   :  { %v270_v38 = vsub.f32 %v243_v34, %v267_v36 }
 0x1ca   :  { %v359_v42 = vadd.f32 %v357_v35, %v757_v40 }
 0x1cb   :  { %v281_v43 = vsel %vm142_vm11, %v270_v38, 0.0 }
 0x1cc   :  { %v282_v44 = vadd.f32 %v281_v43, %v280_v18  ;;  %v377_v46 = vsub.f32 %v359_v42, %v375_v28 }
 0x1ce   :  { %283 = vadd.xlane.f32.xlu2 %v282_v44  ;;  %v381_v7 = vsel %vm379_vm12, %v377_v46, 0.0 }
 0x1cf   :  { %v372_v47 = vpop.xlane.xlu1 %371  ;;  %v383_v55 = vsel %vm142_vm11, %v381_v7, 0.0 }
 0x1d0   :  { %v376_v52 = vsub.f32 %v358_v50, %v372_v47  ;;  %v411_v48 = vpop.xlane.xlu0 %410 }
 0x1d1   :  { %v415_v53 = vsel %vm142_vm11, %v411_v48, 0.0 }
 0x1d2   :  { %v416_v54 = vadd.f32 %v415_v53, %v414_v49  ;;  %v382_v40 = vsel %vm142_vm11, %v376_v52, 0.0 }
 0x1d3   :  { %v384_v56 = vadd.f32 %v383_v55, %v382_v40 }
 0x1d4   :  { %417 = vadd.xlane.f32.xlu1 %v416_v54 }
 0x1d5   :  { %385 = vadd.xlane.f32.xlu0 %v384_v56 }
 0x217   :  { %v147_v57 = vpop.xlane.xlu1 %146 }
 0x218   :  { %v148_v60 = vrot.slane %v147_v57, 4 }
 0x21a   :  { %v149_v61 = vadd.f32 %v148_v60, %v147_v57 }
 0x21c   :  { %v150_v16 = vrot.slane %v149_v61, 2 }
 0x21e   :  { %v151_v62 = vadd.f32 %v150_v16, %v149_v61 }
 0x220   :  { %v152_v63 = vrot.slane %v151_v62, 1 }
 0x222   :  { %v153_v41 = vadd.f32 %v152_v63, %v151_v62 }
 0x224   :  { %455 = vpush %v153_v41 }
 0x241   :  { %v284_v2 = vpop.xlane.xlu2 %283 }
 0x242   :  { %v285_v3 = vrot.slane %v284_v2, 4 }
 0x244   :  { %v286_v4 = vadd.f32 %v285_v3, %v284_v2 }
 0x246   :  { %v287_v51 = vrot.slane %v286_v4, 2 }
 0x247   :  { %v418_v5 = vpop.xlane.xlu1 %417 }
 0x248   :  { %v288_v39 = vadd.f32 %v287_v51, %v286_v4  ;;  %v419_v6 = vrot.slane %v418_v5, 4  ;;  %v386_v8 = vpop.xlane.xlu0 %385 }
 0x249   :  { %v387_v9 = vrot.slane %v386_v8, 4 }
 0x24a   :  { %v420_v10 = vadd.f32 %v419_v6, %v418_v5  ;;  %v289_v11 = vrot.slane %v288_v39, 1 }
 0x24b   :  { %v388_v12 = vadd.f32 %v387_v9, %v386_v8 }
 0x24c   :  { %v421_v13 = vrot.slane %v420_v10, 2  ;;  %v290_v14 = vadd.f32 %v289_v11, %v288_v39 }
 0x24d   :  { %v389_v15 = vrot.slane %v388_v12, 2 }
 0x24e   :  { %v422_v17 = vadd.f32 %v421_v13, %v420_v10  ;;  %457 = vpush %v290_v14 }
 0x24f   :  { %v390_v18 = vadd.f32 %v389_v15, %v388_v12 }
 0x250   :  { %v423_v19 = vrot.slane %v422_v17, 1 }
 0x251   :  { %v391_v58 = vrot.slane %v390_v18, 1 }
 0x252   :  { %v424_v20 = vadd.f32 %v423_v19, %v422_v17 }
 0x253   :  { %v392_v21 = vadd.f32 %v391_v58, %v390_v18 }
 0x255   :  { %s456_s12 = spop %455  ;;  %459 = vpush %v392_v21 }
 0x256   :  { %s155_s13 = smul.f32 0.0625, %s456_s12  ;;  %461 = vpush %v424_v20 }
 0x258   :  { %157 = sst [smem:[#allocation2]] %s155_s13 }
 0x27f   :  { %s458_s16 = spop %457 }
 0x280   :  { %s292_s17 = smul.f32 0.041666668, %s458_s16 }
 0x282   :  { %294 = sst [smem:[#allocation2 + $0x1]] %s292_s17 }
 0x286   :  { %s460_s1 = spop %459 }
 0x287   :  { %s394_s0 = smul.f32 0.083333336, %s460_s1  ;;  %s462_s21 = spop %461 }
 0x288   :  { %s426_s4 = smul.f32 0.020833334, %s462_s21 }
 0x289   :  { %396 = sst [smem:[#allocation2 + $0x2]] %s394_s0 }
 0x28a   :  { %428 = sst [smem:[#allocation2 + $0x3]] %s426_s4 }
 0x28b   :  { %437 = dma.smem_to_vmem %s514_s5, 16, %s435_s20, [#allocation3]  }
 0x28c   :  { %511 = dma.done.wait [#allocation3], 16  }
 0x28d   :  { %512 = vsyncadd [#allocation3], 4294967280 }
 0x28e   :  { %442 = sfence }
 0x28f   :  { %443 = vsyncpa [#allocation3], 1 }

</bundles_post_ra>
